<compile_context>
chip_gen: v7x
topology: tpu7x:2x2x1
jax: 0.10.0
libtpu: 0.0.40
codegen_flags: <defaults>
</compile_context>

<pallas_src>
import functools

import jax
import jax.numpy as jnp
from jax import lax
from jax.experimental import pallas as pl
from jax.experimental.pallas import tpu as pltpu


def _round_up(x: int, m: int) -> int:
    return ((x + m - 1) // m) * m


def _sparsenet_fused_kernel(img_ref, wt_ref, pred_ref, *, r_lr, lmda, tol, max_iters):
    """Fused SparseNet forward.

    img_ref : [Bp, M2p]  zero-padded image batch (VMEM)
    wt_ref  : [Kp, M2p]  zero-padded TRANSPOSED dictionary (W^T), unit-norm rows in
                         the valid region (VMEM)
    pred_ref: [Bp, M2p]  reconstruction output
    """
    img = img_ref[...]              # [Bp, M2p] f32, loaded once
    Wt = wt_ref[...]                # [Kp, M2p] f32, loaded once
    Bp = img.shape[0]
    Kp = Wt.shape[0]

    two_lr = jnp.float32(2.0 * r_lr)
    lmda_f = jnp.float32(lmda)
    tol2 = jnp.float32(tol * tol)

    # ---- one-time prologue: hoist all loop-invariant matmuls (stay in VMEM) ----
    # Gram matrix G = W^T W = Wt @ Wt^T  (transpose-RHS contraction, MXU-native).
    G = lax.dot_general(Wt, Wt, dimension_numbers=(((1,), (1,)), ((), ())),
                        preferred_element_type=jnp.float32)            # [Kp, Kp]
    row = lax.broadcasted_iota(jnp.int32, (Kp, Kp), 0)
    col = lax.broadcasted_iota(jnp.int32, (Kp, Kp), 1)
    eye = jnp.where(row == col, jnp.float32(1.0), jnp.float32(0.0))
    A = eye - two_lr * G                                                # [Kp, Kp]
    # Constant drive term Cs = 2*lr * (img @ W) = 2*lr * img @ Wt^T.
    Cs = two_lr * lax.dot_general(img, Wt,
                                  dimension_numbers=(((1,), (1,)), ((), ())),
                                  preferred_element_type=jnp.float32)   # [Bp, Kp]

    def cond(carry):
        _, _, converged, it = carry
        return jnp.logical_and(converged == 0, it < max_iters)

    def body(carry):
        R, r2_old, _, it = carry
        # SGD step folded into one matmul:
        #   R - lr * (-2*(img - R@W^T)@W) == R @ (I - 2*lr*W^T W) + 2*lr*img@W
        r_step = jnp.dot(R, A, preferred_element_type=jnp.float32) + Cs
        # soft thresholding: relu(x - lmda) - relu(-x - lmda)
        r_new = (jnp.maximum(r_step - lmda_f, 0.0)
                 - jnp.maximum(-r_step - lmda_f, 0.0))
        # torch: norm(R_new - R_old) / norm(R_old) < tol
        #   (0-norm old_R -> nan/inf -> NOT converged; matched because
        #    dr2 < tol^2 * 0 is False)
        dR = r_new - R
        dr2 = jnp.sum(dR * dR)
        r2_new = jnp.sum(r_new * r_new)          # becomes next iteration's old norm
        converged = (dr2 < tol2 * r2_old).astype(jnp.int32)
        return (r_new, r2_new, converged, it + jnp.int32(1))

    R0 = jnp.zeros((Bp, Kp), dtype=jnp.float32)
    R_final, _, _, _ = lax.while_loop(
        cond, body, (R0, jnp.float32(0.0), jnp.int32(0), jnp.int32(0)))

    # Final prediction pred = U(R) = R @ W^T = R @ Wt  (plain MXU matmul).
    pred_ref[...] = jnp.dot(R_final, Wt,
                            preferred_element_type=jnp.float32).astype(pred_ref.dtype)


@functools.partial(jax.jit, static_argnames=("r_lr", "lmda", "tol", "max_iters"))
def _forward_padded(img_p, Wt_p, *, r_lr, lmda, tol, max_iters):
    Bp, M2p = img_p.shape
    Kp = Wt_p.shape[0]
    kernel = functools.partial(
        _sparsenet_fused_kernel,
        r_lr=r_lr, lmda=lmda, tol=tol, max_iters=max_iters)
    return pl.pallas_call(
        kernel,
        out_shape=jax.ShapeDtypeStruct((Bp, M2p), jnp.float32),
        grid=(1,),
        in_specs=[
            pl.BlockSpec((Bp, M2p), lambda i: (0, 0)),
            pl.BlockSpec((Kp, M2p), lambda i: (0, 0)),
        ],
        out_specs=pl.BlockSpec((Bp, M2p), lambda i: (0, 0)),
        compiler_params=pltpu.CompilerParams(
            dimension_semantics=("arbitrary",)),
    )(img_p, Wt_p)


class SparseNetPallas:
    """JAX/Pallas re-implementation of SparseNet.forward()."""

    def __init__(self, K: int, M: int, R_lr: float = 0.1, lmda: float = 0.005,
                 seed: int = 0, max_iters: int = 10000):
        self.K = K
        self.M = M
        self.R_lr = float(R_lr)
        self.lmda = float(lmda)
        # TODO(synk): the PyTorch reference has NO iteration cap; max_iters only guards
        # against a non-converging input (never hit for converging problems).
        self.max_iters = int(max_iters)

        # nn.Linear(K, M**2, bias=False).weight has shape [M**2, K].
        # Deterministic synthetic init, then normalize_weights(): unit-norm columns (dim=0).
        key = jax.random.PRNGKey(seed)
        W = jax.random.normal(key, (M * M, K), dtype=jnp.float32)
        W = W / jnp.linalg.norm(W, axis=0, keepdims=True)
        self.W = W

        # Pre-pad and pre-transpose the dictionary once (model constant):
        # kernel consumes W^T so every in-kernel matmul is MXU-native (no transposes).
        M2 = M * M
        self._M2p = _round_up(max(M2, 128), 128)
        self._Kp = _round_up(max(K, 128), 128)
        self.Wt_p = jnp.pad(W.T, ((0, self._Kp - K), (0, self._M2p - M2)))

    def forward(self, img_batch):
        img = jnp.asarray(img_batch, dtype=jnp.float32)
        B, M2 = img.shape
        assert M2 == self.M * self.M
        # Lane-dense padding: last dim -> multiple of 128, sublane dim -> multiple of 8.
        Bp = _round_up(max(B, 8), 8)
        img_p = jnp.pad(img, ((0, Bp - B), (0, self._M2p - M2)))

        pred_p = _forward_padded(
            img_p, self.Wt_p,
            r_lr=self.R_lr, lmda=self.lmda, tol=0.01, max_iters=self.max_iters)
        return pred_p[:B, :M2]


if __name__ == "__main__":
    # Small shapes consistent with the module: M=4 (image dim 16), K=32 dict atoms, batch=8.
    K, M, B = 32, 4, 8
    net = SparseNetPallas(K=K, M=M, R_lr=0.1, lmda=0.005, seed=0)

    img_key = jax.random.PRNGKey(0)
    _, img_key = jax.random.split(img_key)
    img_batch = jax.random.normal(img_key, (B, M * M), dtype=jnp.float32)

    pred = net.forward(img_batch)
    pred = jax.block_until_ready(pred)
    assert pred.shape == (B, M * M) and pred.dtype == jnp.float32
    assert bool(jnp.all(jnp.isfinite(pred)))
    print("KERNEL_OK")
</pallas_src>

<mosaic_0001>
module attributes {stable_mosaic.version = 11 : i64} {
  func.func @_sparsenet_fused_kernel(%arg0: i32, %arg1: memref<8x128xf32, #tpu.memory_space<vmem>>, %arg2: memref<128x128xf32, #tpu.memory_space<vmem>>, %arg3: memref<8x128xf32, #tpu.memory_space<vmem>>) attributes {dimension_semantics = [#tpu.dimension_semantics<arbitrary>], iteration_bounds = array<i64: 1>, scalar_prefetch = 0 : i64, scratch_operands = 0 : i64, tpu.core_type = #tpu.core_type<tc>, window_params = [{pipeline_mode = #tpu.pipeline_mode<synchronous>, transform_indices = @transform_0, window_bounds = array<i64: 8, 128>}, {pipeline_mode = #tpu.pipeline_mode<synchronous>, transform_indices = @transform_1, window_bounds = array<i64: 128, 128>}, {pipeline_mode = #tpu.pipeline_mode<synchronous>, transform_indices = @transform_2, window_bounds = array<i64: 8, 128>}]} {
    %c0 = arith.constant 0 : index
    %c0_0 = arith.constant 0 : index
    %0 = vector.load %arg1[%c0, %c0_0] : memref<8x128xf32, #tpu.memory_space<vmem>>, vector<8x128xf32>
    %c0_1 = arith.constant 0 : index
    %c0_2 = arith.constant 0 : index
    %1 = vector.load %arg2[%c0_1, %c0_2] : memref<128x128xf32, #tpu.memory_space<vmem>>, vector<128x128xf32>
    %cst = arith.constant dense<0.000000e+00> : vector<128x128xf32>
    %2 = tpu.matmul %1, %1, %cst {dimension_numbers = #tpu.dot_dimension_numbers<[1], [1], [0], [0], [0, 0, 1, 0], [], []>} : vector<128x128xf32>, vector<128x128xf32>, vector<128x128xf32> -> vector<128x128xf32>
    %3 = tpu.iota {dimensions = array<i32: 0>} : vector<128x128xi32>
    %4 = tpu.iota {dimensions = array<i32: 1>} : vector<128x128xi32>
    %5 = arith.cmpi eq, %3, %4 : vector<128x128xi32>
    %cst_3 = arith.constant 1.000000e+00 : f32
    %cst_4 = arith.constant 0.000000e+00 : f32
    %6 = vector.broadcast %cst_3 : f32 to vector<128x128xf32>
    %7 = vector.broadcast %cst_4 : f32 to vector<128x128xf32>
    %8 = arith.select %5, %6, %7 : vector<128x128xi1>, vector<128x128xf32>
    %cst_5 = arith.constant 2.000000e-01 : f32
    %9 = vector.broadcast %cst_5 : f32 to vector<128x128xf32>
    %10 = arith.mulf %9, %2 : vector<128x128xf32>
    %11 = arith.subf %8, %10 : vector<128x128xf32>
    %cst_6 = arith.constant dense<0.000000e+00> : vector<8x128xf32>
    %12 = tpu.matmul %0, %1, %cst_6 {dimension_numbers = #tpu.dot_dimension_numbers<[1], [1], [0], [0], [0, 0, 1, 0], [], []>} : vector<8x128xf32>, vector<128x128xf32>, vector<8x128xf32> -> vector<8x128xf32>
    %cst_7 = arith.constant 2.000000e-01 : f32
    %13 = vector.broadcast %cst_7 : f32 to vector<8x128xf32>
    %14 = arith.mulf %13, %12 : vector<8x128xf32>
    %cst_8 = arith.constant 0.000000e+00 : f32
    %15 = vector.broadcast %cst_8 : f32 to vector<8x128xf32>
    %cst_9 = arith.constant 5.000000e-03 : f32
    %cst_10 = arith.constant 9.99999974E-5 : f32
    %cst_11 = arith.constant 0.000000e+00 : f32
    %c0_i32 = arith.constant 0 : i32
    %c0_i32_12 = arith.constant 0 : i32
    %16:4 = scf.while (%arg4 = %15, %arg5 = %cst_11, %arg6 = %c0_i32, %arg7 = %c0_i32_12) : (vector<8x128xf32>, f32, i32, i32) -> (vector<8x128xf32>, f32, i32, i32) {
      %c0_i32_16 = arith.constant 0 : i32
      %19 = arith.cmpi eq, %arg6, %c0_i32_16 : i32
      %c10000_i32 = arith.constant 10000 : i32
      %20 = arith.cmpi slt, %arg7, %c10000_i32 : i32
      %21 = arith.andi %19, %20 : i1
      scf.condition(%21) %arg4, %arg5, %arg6, %arg7 : vector<8x128xf32>, f32, i32, i32
    } do {
    ^bb0(%arg4: vector<8x128xf32>, %arg5: f32, %arg6: i32, %arg7: i32):
      %cst_16 = arith.constant dense<0.000000e+00> : vector<8x128xf32>
      %19 = tpu.matmul %arg4, %11, %cst_16 {dimension_numbers = #tpu.dot_dimension_numbers<[1], [0], [0], [1], [0, 0, 1, 1], [], []>} : vector<8x128xf32>, vector<128x128xf32>, vector<8x128xf32> -> vector<8x128xf32>
      %20 = arith.addf %19, %14 : vector<8x128xf32>
      %21 = vector.broadcast %cst_9 : f32 to vector<8x128xf32>
      %22 = arith.subf %20, %21 : vector<8x128xf32>
      %cst_17 = arith.constant 0.000000e+00 : f32
      %23 = vector.broadcast %cst_17 : f32 to vector<8x128xf32>
      %24 = arith.maximumf %22, %23 : vector<8x128xf32>
      %cst_18 = arith.constant 0.000000e+00 : f32
      %25 = vector.broadcast %cst_18 : f32 to vector<8x128xf32>
      %26 = arith.subf %25, %20 : vector<8x128xf32>
      %27 = vector.broadcast %cst_9 : f32 to vector<8x128xf32>
      %28 = arith.subf %26, %27 : vector<8x128xf32>
      %cst_19 = arith.constant 0.000000e+00 : f32
      %29 = vector.broadcast %cst_19 : f32 to vector<8x128xf32>
      %30 = arith.maximumf %28, %29 : vector<8x128xf32>
      %31 = arith.subf %24, %30 : vector<8x128xf32>
      %32 = arith.subf %31, %arg4 : vector<8x128xf32>
      %33 = arith.mulf %32, %32 : vector<8x128xf32>
      %34 = vector.shape_cast %33 : vector<8x128xf32> to vector<1x8x128xf32>
      %cst_20 = arith.constant dense<0.000000e+00> : vector<1xf32>
      %35 = vector.multi_reduction <add>, %34, %cst_20 [1, 2] : vector<1x8x128xf32> to vector<1xf32>
      %36 = vector.shape_cast %35 : vector<1xf32> to vector<1x1x1xf32>
      %37 = vector.extract %36[0, 0, 0] : f32 from vector<1x1x1xf32>
      %38 = arith.mulf %31, %31 : vector<8x128xf32>
      %39 = vector.shape_cast %38 : vector<8x128xf32> to vector<1x8x128xf32>
      %cst_21 = arith.constant dense<0.000000e+00> : vector<1xf32>
      %40 = vector.multi_reduction <add>, %39, %cst_21 [1, 2] : vector<1x8x128xf32> to vector<1xf32>
      %41 = vector.shape_cast %40 : vector<1xf32> to vector<1x1x1xf32>
      %42 = vector.extract %41[0, 0, 0] : f32 from vector<1x1x1xf32>
      %43 = arith.mulf %cst_10, %arg5 : f32
      %44 = arith.cmpf olt, %37, %43 : f32
      %45 = arith.extui %44 : i1 to i32
      %c1_i32 = arith.constant 1 : i32
      %46 = arith.addi %arg7, %c1_i32 : i32
      scf.yield %31, %42, %45, %46 : vector<8x128xf32>, f32, i32, i32
    }
    %cst_13 = arith.constant dense<0.000000e+00> : vector<8x128xf32>
    %17 = tpu.matmul %16#0, %1, %cst_13 {dimension_numbers = #tpu.dot_dimension_numbers<[1], [0], [0], [1], [0, 0, 1, 1], [], []>} : vector<8x128xf32>, vector<128x128xf32>, vector<8x128xf32> -> vector<8x128xf32>
    %c0_14 = arith.constant 0 : index
    %c0_15 = arith.constant 0 : index
    %18 = vector.load %arg3[%c0_14, %c0_15] : memref<8x128xf32, #tpu.memory_space<vmem>>, vector<8x128xf32>
    tpu.vector_store %arg3[%c0_14, %c0_15], %17 {strides = array<i32>} : memref<8x128xf32, #tpu.memory_space<vmem>>, vector<8x128xf32>,
    return
  }
  func.func @transform_0(%arg0: i32) -> (i32, i32) {
    %c0_i32 = arith.constant 0 : i32
    %c0_i32_0 = arith.constant 0 : i32
    %c0_i32_1 = arith.constant 0 : i32
    return %c0_i32, %c0_i32_0 : i32, i32
  }
  func.func @transform_1(%arg0: i32) -> (i32, i32) {
    %c0_i32 = arith.constant 0 : i32
    %c0_i32_0 = arith.constant 0 : i32
    %c0_i32_1 = arith.constant 0 : i32
    return %c0_i32, %c0_i32_0 : i32, i32
  }
  func.func @transform_2(%arg0: i32) -> (i32, i32) {
    %c0_i32 = arith.constant 0 : i32
    %c0_i32_0 = arith.constant 0 : i32
    %c0_i32_1 = arith.constant 0 : i32
    return %c0_i32, %c0_i32_0 : i32, i32
  }
}

</mosaic_0001>

<bundles_post_ra>
// kernel: _forward_padded.1
= control target key start
LH: loop header
LB: loop body
LE: loop exit
PB: predicated region body
PF: predicated region fallthrough
CT: control target
= control target key end

     0   :  { %7 = vsyncpa [#allocation3], 0  ;;  %s1409_s0 = inlined_call_operand.hbm [shape: f32[8,128], index: 0, kind: input, shape index: {}]   ;;  %s1410_s1 = inlined_call_operand.hbm [shape: f32[128,128], index: 1, kind: input, shape index: {}]   ;;  %s1411_s2 = inlined_call_operand.hbm [shape: f32[8,128], index: 2, kind: output, shape index: {}]  }
   0x1   :  { %8 = vsyncpa [#allocation6], 0 }
   0x2   :  { %9 = vsyncpa [#allocation4], 0  ;;  %s1052_s9 = smov [#allocation2]   ;;  %s1053_s11 = smov [#allocation5]  }
   0x3   :  { %s16_s10 = sshll.u32 %s1052_s9, 4  ;;  %s25_s12 = sshll.u32 %s1053_s11, 4  ;;  %s17_s10 = int_to_ptr.vmem [resolvable:$true] %s16_s10  ;;  %s1078_s12 = int_to_ptr.vmem [resolvable:$true] %s25_s12 }
   0x4   :  { %s956_s15 = scalar_lea.hbm %s1409_s0, 128 }
   0x5   :  { %p957_p0 = scmp.ne.s32.totalorder %s1409_s0, %s956_s15  ;;  %p960_p1 = scmp.lt.u32.totalorder %s956_s15, %s1409_s0 }
   0x7   :  { %p962_p2 = pnand %p960_p1, %p957_p0 }
   0x9   :  { %965 = shalt.err (!%p962_p2)
}
   0xa   :  { %s966_s20 = scalar_lea.vmem %s17_s10, 128  ;;  %p971_p4 = scmp.lt.s32.totalorder %s17_s10, %s17_s10 }
   0xb   :  { %p967_p3 = scmp.ne.s32.totalorder %s17_s10, %s966_s20  ;;  %p972_p5 = scmp.lt.s32.totalorder %s966_s20, %s966_s20 }
   0xd   :  { %p973_p6 = por %p972_p5, %p971_p4 }
   0xf   :  { %p974_p7 = pnand %p973_p6, %p967_p3 }
  0x11   :  { %977 = shalt.err (!%p974_p7)
}
  0x12   :  { %19 = dma.hbm_to_vmem [thread:$0]  %s1409_s0, 128, %s17_s10, [#allocation3]  }
  0x13   :  { %s978_s25 = scalar_lea.hbm %s1410_s1, 2048 }
  0x14   :  { %p979_p8 = scmp.ne.s32.totalorder %s1410_s1, %s978_s25  ;;  %p982_p9 = scmp.lt.u32.totalorder %s978_s25, %s1410_s1 }
  0x16   :  { %p984_p10 = pnand %p982_p9, %p979_p8 }
  0x18   :  { %987 = shalt.err (!%p984_p10)
}
  0x19   :  { %s988_s30 = scalar_lea.vmem %s1078_s12, 2048  ;;  %p993_p12 = scmp.lt.s32.totalorder %s1078_s12, %s1078_s12 }
  0x1a   :  { %p989_p11 = scmp.ne.s32.totalorder %s1078_s12, %s988_s30  ;;  %p994_p13 = scmp.lt.s32.totalorder %s988_s30, %s988_s30 }
  0x1c   :  { %p995_p0 = por %p994_p13, %p993_p12 }
  0x1e   :  { %p996_p1 = pnand %p995_p0, %p989_p11 }
  0x20   :  { %999 = shalt.err (!%p996_p1)
}
  0x21   :  { %s1054_s0 = smov 128   ;;  %s1055_s3 = smov 8  }
  0x22   :  { %31 = dma.hbm_to_vmem [thread:$0]  %s1410_s1, 2048, %s1078_s12, [#allocation6], %s1054_s0, %s1054_s0, %s1055_s3  }
  0x23   :  { %1034 = dma.done.wait [#allocation3], 128  }
  0x24   :  { %1035 = vsyncadd [#allocation3], 4294967168 }
  0x25   :  { %1036 = dma.done.wait [#allocation6], 2048  }
  0x26   :  { %1037 = vsyncadd [#allocation6], 4294965248  ;;  %v1056_v0 = vmov 0.0|0.0   ;;  %vm1057_vm0 = vmmov 0   ;;  %v1058_v1 = vmov 0.0   ;;  %v39_v2 = vld [vmem:[#allocation5] sm:$0xff]  ;;  %v200_v27 = vlaneseq }
  0x27   :  { %845 = vmatprep.subr.bf16.mxu1 %v1056_v0  ;;  %740 = vmatprep.mubr.msk.f32.mxu1 %vm1057_vm0, %v1058_v1  ;;  %v40_v3 = vld [vmem:[#allocation5 + $0x8] sm:$0xff]  ;;  %v41_v4 = vld [vmem:[#allocation5 + $0x10] sm:$0xff]  ;;  %v42_v6 = vld [vmem:[#allocation5 + $0x18] sm:$0xff]  ;;  %s1309_s1 = smov 0   ;;  %s1311_s6 = smov 0.0  }
  0x28   :  { %v1112_v5 = vpack.c.bf16 %v40_v3, %v39_v2  ;;  %684 = vmatprep.mubr.f32.mxu0 %v39_v2  ;;  %v1114_v7 = vpack.c.bf16 %v42_v6, %v41_v4  ;;  %v43_v8 = vld [vmem:[#allocation5 + $0x20] sm:$0xff]  ;;  %v44_v9 = vld [vmem:[#allocation5 + $0x28] sm:$0xff]  ;;  %v45_v11 = vld [vmem:[#allocation5 + $0x30] sm:$0xff]  ;;  %v1159_v28 = vshrl.u32 %v200_v27, 7  ;;  %v1162_v30 = vand.u32 127, %v200_v27 }
  0x29   :  { %v1121_v10 = vpack.c.bf16 %v44_v9, %v43_v8  ;;  %v46_v12 = vld [vmem:[#allocation5 + $0x38] sm:$0xff]  ;;  %v47_v14 = vld [vmem:[#allocation5 + $0x40] sm:$0xff]  ;;  %v48_v15 = vld [vmem:[#allocation5 + $0x48] sm:$0xff] }
  0x2a   :  { %814 = vmatprep.subr.bf16.mxu0 %v1112_v5  ;;  %847 = vmatpush3.bf16.xpose.msra.mxu1 %v1112_v5  ;;  %v1127_v13 = vpack.c.bf16 %v46_v12, %v45_v11  ;;  %v1133_v16 = vpack.c.bf16 %v48_v15, %v47_v14  ;;  %v49_v17 = vld [vmem:[#allocation5 + $0x50] sm:$0xff]  ;;  %v50_v18 = vld [vmem:[#allocation5 + $0x58] sm:$0xff]  ;;  %v51_v20 = vld [vmem:[#allocation5 + $0x60] sm:$0xff]  ;;  %v202_v29 = vadd.s32 8, %v1159_v28  ;;  %v204_v31 = vadd.s32 24, %v1159_v28 }
  0x2b   :  { %816 = vmatpush3.bf16.xpose.msra.mxu0 %v1112_v5  ;;  %848 = vmatprep.subr.bf16.mxu1 %v1056_v0  ;;  %v1139_v19 = vpack.c.bf16 %v50_v18, %v49_v17  ;;  %v52_v21 = vld [vmem:[#allocation5 + $0x68] sm:$0xff]  ;;  %v53_v23 = vld [vmem:[#allocation5 + $0x70] sm:$0xff]  ;;  %v54_v24 = vld [vmem:[#allocation5 + $0x78] sm:$0xff]  ;;  %vm219_vm2 = vcmp.eq.s32.totalorder %v1159_v28, %v1162_v30  ;;  %v203_v32 = vadd.s32 16, %v1159_v28  ;;  %v206_v41 = vadd.s32 40, %v1159_v28 }
  0x2c   :  { %818 = vmatprep.subr.bf16.mxu0 %v1114_v7  ;;  %v1145_v22 = vpack.c.bf16 %v52_v21, %v51_v20  ;;  %v1151_v25 = vpack.c.bf16 %v54_v24, %v53_v23  ;;  %v38_v26 = vld [vmem:[#allocation2] sm:$0xff]  ;;  %vm220_vm1 = vcmp.eq.s32.totalorder %v202_v29, %v1162_v30  ;;  %v1177_v40 = vsel %vm219_vm2, 1.0, %v1058_v1 }
  0x2d   :  { %v1170_v35 = vsel %vm220_vm1, 1.0, %v1058_v1  ;;  %vm222_vm3 = vcmp.eq.s32.totalorder %v204_v31, %v1162_v30  ;;  %vm221_vm4 = vcmp.eq.s32.totalorder %v203_v32, %v1162_v30  ;;  %v205_v43 = vadd.s32 32, %v1159_v28 }
  0x2e   :  { %v1190_v47 = vsel %vm222_vm3, 1.0, %v1058_v1  ;;  %v1195_v50 = vsel %vm221_vm4, 1.0, %v1058_v1  ;;  %vm224_vm5 = vcmp.eq.s32.totalorder %v206_v41, %v1162_v30  ;;  %v208_v51 = vadd.s32 56, %v1159_v28 }
  0x2f   :  { %vm223_vm6 = vcmp.eq.s32.totalorder %v205_v43, %v1162_v30  ;;  %v207_v53 = vadd.s32 48, %v1159_v28  ;;  %v1208_v57 = vsel %vm224_vm5, 1.0, %v1058_v1  ;;  %v210_v61 = vadd.s32 72, %v1159_v28 }
  0x30   :  { %v1213_v60 = vsel %vm223_vm6, 1.0, %v1058_v1  ;;  %vm226_vm7 = vcmp.eq.s32.totalorder %v208_v51, %v1162_v30  ;;  %v209_v63 = vadd.s32 64, %v1159_v28  ;;  %v214_v27 = vadd.s32 104, %v1159_v28 }
  0x31   :  { %vm225_vm8 = vcmp.eq.s32.totalorder %v207_v53, %v1162_v30  ;;  %vm228_vm9 = vcmp.eq.s32.totalorder %v210_v61, %v1162_v30  ;;  %v213_v31 = vadd.s32 96, %v1159_v28  ;;  %v215_v51 = vadd.s32 112, %v1159_v28 }
  0x32   :  { %850 = vmatpush3.bf16.xpose.msra.mxu1 %v1114_v7  ;;  %vm227_vm10 = vcmp.eq.s32.totalorder %v209_v63, %v1162_v30  ;;  %vm232_vm13 = vcmp.eq.s32.totalorder %v214_v27, %v1162_v30 }
  0x33   :  { %820 = vmatpush3.bf16.xpose.msra.mxu0 %v1114_v7  ;;  %851 = vmatprep.subr.bf16.mxu1 %v1056_v0  ;;  %vm231_vm14 = vcmp.eq.s32.totalorder %v213_v31, %v1162_v30  ;;  %v1280_v61 = vsel %vm232_vm13, 1.0, %v1058_v1  ;;  %vm233_vm1 = vcmp.eq.s32.totalorder %v215_v51, %v1162_v30  ;;  %v1313_v51 = vmov 0.0  }
  0x34   :  { %822 = vmatprep.subr.bf16.mxu0 %v1121_v10 }
  0x3a   :  { %853 = vmatpush3.bf16.xpose.msra.mxu1 %v1121_v10 }
  0x3b   :  { %824 = vmatpush3.bf16.xpose.msra.mxu0 %v1121_v10  ;;  %854 = vmatprep.subr.bf16.mxu1 %v1056_v0 }
  0x3c   :  { %826 = vmatprep.subr.bf16.mxu0 %v1127_v13 }
  0x42   :  { %856 = vmatpush3.bf16.xpose.msra.mxu1 %v1127_v13 }
  0x43   :  { %828 = vmatpush3.bf16.xpose.msra.mxu0 %v1127_v13  ;;  %857 = vmatprep.subr.bf16.mxu1 %v1056_v0 }
  0x44   :  { %830 = vmatprep.subr.bf16.mxu0 %v1133_v16 }
  0x4a   :  { %859 = vmatpush3.bf16.xpose.msra.mxu1 %v1133_v16 }
  0x4b   :  { %832 = vmatpush3.bf16.xpose.msra.mxu0 %v1133_v16  ;;  %860 = vmatprep.subr.bf16.mxu1 %v1056_v0 }
  0x4c   :  { %834 = vmatprep.subr.bf16.mxu0 %v1139_v19 }
  0x52   :  { %862 = vmatpush3.bf16.xpose.msra.mxu1 %v1139_v19 }
  0x53   :  { %836 = vmatpush3.bf16.xpose.msra.mxu0 %v1139_v19  ;;  %863 = vmatprep.subr.bf16.mxu1 %v1056_v0 }
  0x54   :  { %838 = vmatprep.subr.bf16.mxu0 %v1145_v22 }
  0x5a   :  { %865 = vmatpush3.bf16.xpose.msra.mxu1 %v1145_v22 }
  0x5b   :  { %840 = vmatpush3.bf16.xpose.msra.mxu0 %v1145_v22  ;;  %866 = vmatprep.subr.bf16.mxu1 %v1056_v0 }
  0x5c   :  { %842 = vmatprep.subr.bf16.mxu0 %v1151_v25 }
  0x62   :  { %868 = vmatpush3.bf16.xpose.msra.mxu1 %v1151_v25 }
  0x63   :  { %844 = vmatpush3.bf16.xpose.msra.mxu0 %v1151_v25 }
  0x69   :  { %741 = vmatmul.mubr.f32.vlgmr.msra.gmra.mrb[0].mxu1 %v38_v26  ;;  %v1249_v26 = vsel %vm227_vm10, 1.0, %v1058_v1 }
  0x6a   :  { %685 = vmatmul.mubr.f32.vlgmr.msra.gmra.mrb[0].mxu0 %v40_v3 }
  0x6b   :  { %687 = vmatprep.mubr.f32.mxu0 %v41_v4 }
  0x6e   :  { %688 = vmatmul.mubr.f32.gmra.mrb[2].mxu0 %v42_v6  ;;  %v1226_v6 = vsel %vm226_vm7, 1.0, %v1058_v1 }
  0x6f   :  { %690 = vmatprep.mubr.f32.mxu0 %v43_v8 }
  0x72   :  { %691 = vmatmul.mubr.f32.gmra.mrb[4].mxu0 %v44_v9 }
  0x73   :  { %693 = vmatprep.mubr.f32.mxu0 %v45_v11  ;;  %v1231_v11 = vsel %vm225_vm8, 1.0, %v1058_v1 }
  0x76   :  { %694 = vmatmul.mubr.f32.gmra.mrb[6].mxu0 %v46_v12  ;;  %v212_v12 = vadd.s32 88, %v1159_v28 }
  0x77   :  { %696 = vmatprep.mubr.f32.mxu0 %v47_v14 }
  0x78   :  { %vm230_vm11 = vcmp.eq.s32.totalorder %v212_v12, %v1162_v30 }
  0x7a   :  { %697 = vmatmul.mubr.f32.gmra.mrb[8].mxu0 %v48_v15  ;;  %v211_v15 = vadd.s32 80, %v1159_v28 }
  0x7b   :  { %699 = vmatprep.mubr.f32.mxu0 %v49_v17 }
  0x7c   :  { %vm229_vm12 = vcmp.eq.s32.totalorder %v211_v15, %v1162_v30 }
  0x7d   :  { %v1267_v43 = vsel %vm229_vm12, 1.0, %v1058_v1 }
  0x7e   :  { %700 = vmatmul.mubr.f32.gmra.mrb[10].mxu0 %v50_v18 }
  0x7f   :  { %702 = vmatprep.mubr.f32.mxu0 %v51_v20 }
  0x82   :  { %703 = vmatmul.mubr.f32.gmra.mrb[12].mxu0 %v52_v21  ;;  %v1244_v21 = vsel %vm228_vm9, 1.0, %v1058_v1 }
  0x83   :  { %705 = vmatprep.mubr.f32.mxu0 %v53_v23 }
  0x86   :  { %706 = vmatmul.mubr.f32.gmra.mrb[14].mxu0 %v54_v24 }
 0x13c   :  { %v349_v33 = vpop.f32.mrb[0].mxu1 }
 0x13d   :  { %v686_v34 = vpop.f32.mrb[0].mxu0  ;;  %v1172_v36 = vmul.f32 0.2, %v349_v33  ;;  %v742_v37 = vpop.f32.mrb[1].mxu1 }
 0x13e   :  { %v1174_v38 = vmul.f32 0.2, %v686_v34  ;;  %v121_v39 = vpop.f32.mrb[1].mxu0  ;;  %v1262_v37 = vsel %vm230_vm11, 1.0, %v1058_v1 }
 0x13f   :  { %v1181_v42 = vmul.f32 0.2, %v121_v39 }
 0x141   :  { %v689_v46 = vpop.f32.mrb[2].mxu0 }
 0x142   :  { %v1192_v48 = vmul.f32 0.2, %v689_v46  ;;  %v131_v49 = vpop.f32.mrb[3].mxu0  ;;  %v216_v46 = vadd.s32 120, %v1159_v28 }
 0x143   :  { %v1199_v52 = vmul.f32 0.2, %v131_v49 }
 0x144   :  { %vm234_vm15 = vcmp.eq.s32.totalorder %v216_v46, %v1162_v30 }
 0x145   :  { %v269_v55 = vsub.f32 %v1195_v50, %v1199_v52  ;;  %v692_v56 = vpop.f32.mrb[4].mxu0 }
 0x146   :  { %v1210_v58 = vmul.f32 0.2, %v692_v56  ;;  %v141_v59 = vpop.f32.mrb[5].mxu0 }
 0x147   :  { %v1217_v62 = vmul.f32 0.2, %v141_v59 }
 0x149   :  { %v695_v4 = vpop.f32.mrb[6].mxu0 }
 0x14a   :  { %v1228_v8 = vmul.f32 0.2, %v695_v4  ;;  %v151_v9 = vpop.f32.mrb[7].mxu0 }
 0x14b   :  { %v1235_v14 = vmul.f32 0.2, %v151_v9  ;;  %v1285_v9 = vsel %vm231_vm14, 1.0, %v1058_v1 }
 0x14d   :  { %v698_v20 = vpop.f32.mrb[8].mxu0 }
 0x14e   :  { %v1246_v23 = vmul.f32 0.2, %v698_v20  ;;  %v161_v24 = vpop.f32.mrb[9].mxu0 }
 0x14f   :  { %v1253_v29 = vmul.f32 0.2, %v161_v24  ;;  %v1296_v24 = vsel %vm234_vm15, 1.0, %v1058_v1 }
 0x151   :  { %v701_v34 = vpop.f32.mrb[10].mxu0 }
 0x152   :  { %v1264_v39 = vmul.f32 0.2, %v701_v34  ;;  %v171_v41 = vpop.f32.mrb[11].mxu0  ;;  %v1301_v34 = vsel %vm233_vm1, 1.0, %v1058_v1 }
 0x153   :  { %v1271_v49 = vmul.f32 0.2, %v171_v41 }
 0x155   :  { %v277_v56 = vsub.f32 %v1267_v43, %v1271_v49  ;;  %v704_v59 = vpop.f32.mrb[12].mxu0 }
 0x156   :  { %v1282_v63 = vmul.f32 0.2, %v704_v59  ;;  %v181_v4 = vpop.f32.mrb[13].mxu0 }
 0x157   :  { %v1288_v12 = vmul.f32 0.2, %v181_v4 }
 0x159   :  { %v707_v20 = vpop.f32.mrb[14].mxu0 }
 0x15a   :  { %v1298_v27 = vmul.f32 0.2, %v707_v20  ;;  %v191_v31 = vpop.f32.mrb[15].mxu0 }
 0x15b   :  { %v1303_v41 = vmul.f32 0.2, %v191_v31 }
 0x15c LB: > { %v1412_v45 = vsub.f32 %v1177_v40, %v1181_v42  ;;  %v1413_v44 = vsub.f32 %v1170_v35, %v1174_v38  ;;  %v1059_v4 = vmov 0.0|0.0   ;;  %v1414_v54 = vsub.f32 %v1190_v47, %v1192_v48  ;;  %s465_s1 = sadd.s32 1, %s1042_s1   ;;  %s462_s7 = smul.f32 0.0001, %s1046_s6  ;;  %v1050_v51 = vphi %v1313_v51, %v1426_v51   ;;  %s1046_s6 = sphi %s1311_s6, %s920_s6   ;;  %s1042_s1 = sphi %s1309_s1, %s465_s1  }
 0x15d   : > { %869 = vmatprep.subr.bf16.mxu0 %v1059_v4  ;;  %vm1060_vm2 = vmmov 0   ;;  %v1061_v31 = vmov 0.0   ;;  %v1415_v3 = vsub.f32 %v1213_v60, %v1217_v62  ;;  %v1416_v2 = vsub.f32 %v1208_v57, %v1210_v58  ;;  %p360_p4 = scmp.lt.s32.totalorder %s465_s1, 10000 }
 0x15e   : > { %v870_v59 = vpack.c.bf16 %v1413_v44, %v1412_v45  ;;  %v873_v20 = vpack.c.bf16 %v1414_v54, %v269_v55  ;;  %775 = vmatprep.mubr.msk.f32.mxu0 %vm1060_vm2, %v1061_v31  ;;  %v1417_v18 = vsub.f32 %v1231_v11, %v1235_v14  ;;  %v1418_v17 = vsub.f32 %v1226_v6, %v1228_v8 }
 0x15f   : > { %v876_v44 = vpack.c.bf16 %v1416_v2, %v1415_v3  ;;  %v1419_v33 = vsub.f32 %v1249_v26, %v1253_v29  ;;  %v1420_v32 = vsub.f32 %v1244_v21, %v1246_v23  ;;  %v1421_v53 = vsub.f32 %v1262_v37, %v1264_v39 }
 0x160   : > { %871 = vmatpush3.bf16.msra.mxu0 %v870_v59  ;;  %v879_v59 = vpack.c.bf16 %v1418_v17, %v1417_v18  ;;  %v1422_v15 = vsub.f32 %v1285_v9, %v1288_v12  ;;  %v1423_v28 = vsub.f32 %v1280_v61, %v1282_v63  ;;  %v1424_v46 = vsub.f32 %v1301_v34, %v1303_v41 }
 0x161   : > { %872 = vmatprep.subr.bf16.mxu0 %v1059_v4  ;;  %v1425_v30 = vsub.f32 %v1296_v24, %v1298_v27 }
 0x162   : > { %v888_v31 = vpack.c.bf16 %v1423_v28, %v1422_v15 }
 0x164   : > { %874 = vmatpush3.bf16.msra.mxu0 %v873_v20  ;;  %v882_v20 = vpack.c.bf16 %v1420_v32, %v1419_v33 }
 0x165   : > { %875 = vmatprep.subr.bf16.mxu0 %v1059_v4 }
 0x168   : > { %877 = vmatpush3.bf16.msra.mxu0 %v876_v44  ;;  %v885_v44 = vpack.c.bf16 %v1421_v53, %v277_v56 }
 0x169   : > { %878 = vmatprep.subr.bf16.mxu0 %v1059_v4 }
 0x16c   : > { %880 = vmatpush3.bf16.msra.mxu0 %v879_v59  ;;  %v891_v59 = vpack.c.bf16 %v1425_v30, %v1424_v46 }
 0x16d   : > { %881 = vmatprep.subr.bf16.mxu0 %v1059_v4 }
 0x170   : > { %883 = vmatpush3.bf16.msra.mxu0 %v882_v20 }
 0x171   : > { %884 = vmatprep.subr.bf16.mxu0 %v1059_v4 }
 0x174   : > { %886 = vmatpush3.bf16.msra.mxu0 %v885_v44 }
 0x175   : > { %887 = vmatprep.subr.bf16.mxu0 %v1059_v4 }
 0x178   : > { %889 = vmatpush3.bf16.msra.mxu0 %v888_v31 }
 0x179   : > { %890 = vmatprep.subr.bf16.mxu0 %v1059_v4 }
 0x17c   : > { %892 = vmatpush3.bf16.msra.mxu0 %v891_v59 }
 0x17f   : > { %776 = vmatmul.mubr.f32.vlgmr.msra.gmra.mrb[0].mxu0 %v1050_v51 }
 0x252   : > { %v431_v20 = vpop.f32.mrb[0].mxu0 }
 0x253   : > { %v432_v44 = vadd.f32 %v431_v20, %v1172_v36  ;;  %v777_v2 = vpop.f32.mrb[1].mxu0 }
 0x255   : > { %v567_v3 = vadd.f32 -0.005, %v432_v44  ;;  %v437_v17 = vsub.f32 0.0, %v432_v44 }
 0x257   : > { %v568_v15 = vadd.f32 -0.005, %v437_v17  ;;  %v436_v18 = vmax.f32 %v567_v3, 0.0 }
 0x259   : > { %v439_v31 = vmax.f32 %v568_v15, 0.0 }
 0x25b   : > { %v440_v28 = vsub.f32 %v436_v18, %v439_v31  }
 0x25d   : > { %v441_v32 = vsub.f32 %v440_v28, %v1050_v51  ;;  %v452_v45 = vmul.f32 %v440_v28, %v440_v28  ;;  %v1426_v51 = vmov %v440_v28 }
 0x25f   : > { %v442_v33 = vmul.f32 %v441_v32, %v441_v32 }
 0x261   : > { %443 = vadd.xlane.f32.xlu0 %v442_v33 }
 0x265   : > { %453 = vadd.xlane.f32.xlu0 %v452_v45 }
 0x2ee   : > { %v444_v4 = vpop.xlane.xlu0 %443 }
 0x2ef   : > { %v445_v59 = vrot.slane %v444_v4, 4 }
 0x2f1   : > { %v446_v30 = vadd.f32 %v445_v59, %v444_v4 }
 0x2f2   : > { %v454_v46 = vpop.xlane.xlu0 %453 }
 0x2f3   : > { %v447_v53 = vrot.slane %v446_v30, 2  ;;  %v455_v20 = vrot.slane %v454_v46, 4 }
 0x2f5   : > { %v456_v2 = vadd.f32 %v455_v20, %v454_v46  ;;  %v448_v54 = vadd.f32 %v447_v53, %v446_v30 }
 0x2f7   : > { %v457_v44 = vrot.slane %v456_v2, 2  ;;  %v449_v17 = vrot.slane %v448_v54, 1 }
 0x2f9   : > { %v458_v3 = vadd.f32 %v457_v44, %v456_v2  ;;  %v450_v15 = vadd.f32 %v449_v17, %v448_v54 }
 0x2fb   : > { %917 = vpush %v450_v15  ;;  %v459_v18 = vrot.slane %v458_v3, 1 }
 0x2fd   : > { %v460_v32 = vadd.f32 %v459_v18, %v458_v3 }
 0x2ff   : > { %919 = vpush %v460_v32 }
 0x32c   : > { %s918_s8 = spop %917 }
 0x32d   : > { %p463_p2 = scmp.lt.f32.partialorder %s918_s8, %s462_s7 }
 0x32f   : > { %s464_s9 = scalar_select %p463_p2, 1, 0 }
 0x330   : > { %s920_s6 = spop %919  }
 0x331   : > { %p359_p3 = scmp.eq.s32.totalorder %s464_s9, 0 }
 0x333   : > { %p361_p5 = pnand %p360_p4, %p359_p3 }
 0x334   :  { %893 = vmatprep.subr.bf16.mxu0 (%p361_p5), %v1056_v0  ;;  %810 = vmatprep.mubr.msk.f32.mxu0 (%p361_p5), %vm1057_vm0, %v1058_v1  ;;  %s1062_s10 = smov (%p361_p5), [#allocation7]  }
 0x335   :  { %364 = sbr.rel (!%p361_p5) target bundleno = 348 (0x15c), region = 43  ;;  %895 = vmatpush3.bf16.msra.mxu0 (%p361_p5), %v1112_v5  ;;  %s543_s11 = sshll.u32 (%p361_p5), %s1062_s10, 4  ;;  %s544_s11 = int_to_ptr.vmem [resolvable:$true] %s543_s11 }
 0x336   :  { %896 = vmatprep.subr.bf16.mxu0 (%p361_p5), %v1056_v0  ;;  %s1000_s12 = scalar_lea.vmem (%p361_p5), %s544_s11, 128  ;;  %p1005_p7 = scmp.lt.s32.totalorder (%p361_p5), %s544_s11, %s544_s11 }
 0x337   :  { %p1001_p6 = scmp.ne.s32.totalorder (%p361_p5), %s544_s11, %s1000_s12  ;;  %p1006_p8 = scmp.lt.s32.totalorder (%p361_p5), %s1000_s12, %s1000_s12 }
 0x339   :  { %898 = vmatpush3.bf16.msra.mxu0 (%p361_p5), %v1114_v7  ;;  %p1007_p9 = por (%p361_p5), %p1006_p8, %p1005_p7 }
 0x33a   :  { %899 = vmatprep.subr.bf16.mxu0 (%p361_p5), %v1056_v0 }
 0x33b   :  { %p1008_p10 = pnand (%p361_p5), %p1007_p9, %p1001_p6 }
 0x33d   :  { %901 = vmatpush3.bf16.msra.mxu0 %v1121_v10 }
 0x33e   :  { %902 = vmatprep.subr.bf16.mxu0 %v1056_v0 }
 0x341   :  { %904 = vmatpush3.bf16.msra.mxu0 %v1127_v13 }
 0x342   :  { %905 = vmatprep.subr.bf16.mxu0 %v1056_v0 }
 0x345   :  { %907 = vmatpush3.bf16.msra.mxu0 %v1133_v16 }
 0x346   :  { %908 = vmatprep.subr.bf16.mxu0 %v1056_v0 }
 0x349   :  { %910 = vmatpush3.bf16.msra.mxu0 %v1139_v19 }
 0x34a   :  { %911 = vmatprep.subr.bf16.mxu0 %v1056_v0 }
 0x34d   :  { %913 = vmatpush3.bf16.msra.mxu0 %v1145_v22 }
 0x34e   :  { %914 = vmatprep.subr.bf16.mxu0 %v1056_v0 }
 0x351   :  { %916 = vmatpush3.bf16.msra.mxu0 %v1151_v25 }
 0x354   :  { %811 = vmatmul.mubr.f32.vlgmr.msra.gmra.mrb[0].mxu0 %v440_v28 }
 0x427   :  { %v532_v1 = vpop.f32.mrb[0].mxu0 }
 0x428   :  { %536 = vst [vmem:[#allocation7] sm:$0xff] %v532_v1  ;;  %v812_v5 = vpop.f32.mrb[1].mxu0 }
 0x429   :  { %1011 = shalt.err (!%p1008_p10)
}
 0x42a   :  { %s1012_s15 = scalar_lea.hbm %s1411_s2, 128 }
 0x42b   :  { %p1013_p11 = scmp.ne.s32.totalorder %s1411_s2, %s1012_s15  ;;  %p1016_p12 = scmp.lt.u32.totalorder %s1012_s15, %s1411_s2 }
 0x42d   :  { %p1018_p13 = pnand %p1016_p12, %p1013_p11 }
 0x42f   :  { %1021 = shalt.err (!%p1018_p13)
}
 0x430   :  { %546 = dma.vmem_to_hbm [thread:$0]  %s544_s11, 128, %s1411_s2, [#allocation4]  }
 0x431   :  { %1038 = dma.done.wait [#allocation4], 128  }
 0x432   :  { %1039 = vsyncadd [#allocation4], 4294967168 }
 0x433   :  { %550 = vsyncpa [#allocation3], 1 }
 0x434   :  { %551 = vsyncpa [#allocation6], 1 }
 0x435   :  { %552 = vsyncpa [#allocation4], 1 }

</bundles_post_ra>
